<compile_context>
chip_gen: v5e
topology: v5e:2x2
jax: 0.10.0
libtpu: 0.0.40
codegen_flags: <defaults>
</compile_context>

<pallas_src>
import jax
import jax.numpy as jnp
from jax.experimental import pallas as pl
from jax.experimental.pallas import tpu as pltpu

EPS = 1e-5
LANE = 128      # 256 can pay off on v6e/v7x once compute-bound; 128 is MXU-native on v5e.
SUBLANE = 16    # bf16 packs 2 rows per sublane -> batch tiles are multiples of 16.


def _round_up(n, m):
    return ((n + m - 1) // m) * m


def _mlp_kernel(x_ref,
                w1_ref, t1_ref,
                w2_ref, t2_ref,
                w3_ref, t3_ref,
                o_ref):
    """Fused 3-layer MLP: relu(x @ W + shift), chained. bf16 MXU inputs, f32 accumulate/epilogue."""
    h = jnp.dot(x_ref[...], w1_ref[...], preferred_element_type=jnp.float32)
    h = jnp.maximum(h + t1_ref[...], 0.0)

    h = jnp.dot(h.astype(jnp.bfloat16), w2_ref[...], preferred_element_type=jnp.float32)
    h = jnp.maximum(h + t2_ref[...], 0.0)

    h = jnp.dot(h.astype(jnp.bfloat16), w3_ref[...], preferred_element_type=jnp.float32)
    h = jnp.maximum(h + t3_ref[...], 0.0)

    o_ref[...] = h.astype(o_ref.dtype)


def make_params(key, input_size, lane=LANE):
    """Parameters matching the PyTorch module (xavier_uniform weights, zero bias,
    BN defaults gamma=1, beta=0, running_mean=0, running_var=1), pre-folded and
    zero-padded to `lane`-multiple feature dims.

    Returns (params, hidden_sizes) where params[i] = {"w": (Kp, Np) bf16, "shift": (1, Np) f32}.
    Padded weight rows/cols and padded shift entries are zero, so padded feature
    columns stay exactly zero through relu and the chained matmuls.
    """
    hidden_sizes = [max(64, input_size * 2), max(32, input_size), max(16, input_size // 2)]
    params = []
    cur = input_size
    for h in hidden_sizes:
        key, wk = jax.random.split(key)
        bound = (6.0 / (cur + h)) ** 0.5  # xavier_uniform
        w = jax.random.uniform(wk, (cur, h), jnp.float32, -bound, bound)
        b_lin = jnp.zeros((h,), jnp.float32)
        gamma = jnp.ones((h,), jnp.float32)
        beta = jnp.zeros((h,), jnp.float32)
        run_mean = jnp.zeros((h,), jnp.float32)
        run_var = jnp.ones((h,), jnp.float32)

        s = gamma / jnp.sqrt(run_var + EPS)            # BN per-feature scale
        w_folded = w * s[None, :]                      # fold scale into weight columns
        shift = (b_lin - run_mean) * s + beta          # fold linear bias + BN shift

        kp, np_ = _round_up(cur, lane), _round_up(h, lane)
        w_pad = jnp.zeros((kp, np_), jnp.float32).at[:cur, :h].set(w_folded)
        t_pad = jnp.zeros((1, np_), jnp.float32).at[:, :h].set(shift)

        params.append({"w": w_pad.astype(jnp.bfloat16), "shift": t_pad})
        cur = h
    return params, hidden_sizes


def _pick_tb(batch, n_pads, *, target=1024):
    """Batch tile (SUBLANE multiple):
      - capped so the largest f32 intermediate (tb x widest hidden) stays <= ~8 MiB
        (1/4 of the 32 MiB default scoped VMEM on v6e/v7x, 1/2 of v5e's 16 MiB),
      - >= 2 grid steps when the batch allows (v7x megacore sharding of the parallel axis),
      - re-balanced so the last (masked) block carries minimal padding waste.
    """
    n_max = max(n_pads)
    cap = max(SUBLANE, ((8 << 20) // (n_max * 4)) // SUBLANE * SUBLANE)
    tb = max(SUBLANE, min(target, cap))
    if batch >= 2 * SUBLANE:
        tb = min(tb, _round_up(pl.cdiv(batch, 2), SUBLANE))
    steps = pl.cdiv(batch, tb)
    return _round_up(pl.cdiv(batch, steps), SUBLANE)


def base_neural_network_forward(x, params, out_features, *, target_tb=1024,
                                out_dtype=jnp.float32):
    """x: (B, input_size) float32. Returns (B, out_features) `out_dtype`."""
    B, F = x.shape
    d_pad = params[0]["w"].shape[0]
    n_pads = [p["w"].shape[1] for p in params]
    n_out_pad = n_pads[-1]
    out_isize = jnp.dtype(out_dtype).itemsize

    tb = _pick_tb(B, n_pads, target=target_tb)

    # Feature-dim zero pad (padded K columns MUST be zero) + bf16 cast; fuses under jit.
    x_bf = x.astype(jnp.bfloat16)
    if d_pad > F:
        x_bf = jnp.pad(x_bf, ((0, 0), (0, d_pad - F)))

    def row_spec(shape):
        return pl.BlockSpec(shape, lambda b: (b, 0))    # advances with the batch grid

    def const_spec(shape):
        return pl.BlockSpec(shape, lambda b: (0, 0))    # VMEM-resident across grid steps

    inputs = [x_bf]
    in_specs = [row_spec((tb, d_pad))]
    for p in params:
        inputs += [p["w"], p["shift"]]
        in_specs += [const_spec(p["w"].shape), const_spec(p["shift"].shape)]

    # Explicit VMEM budget: double-buffered x/out blocks, resident constants (worst-case
    # double-buffered), and the compiler-held f32 intermediates. Clamp to v7x's 64 MiB.
    const_bytes = sum(p["w"].size * p["w"].dtype.itemsize + p["shift"].size * 4
                      for p in params)
    est = (2 * const_bytes
           + 2 * tb * d_pad * 2
           + 2 * tb * n_out_pad * out_isize
           + 3 * tb * max(n_pads) * 4)
    vmem_limit = int(min(64 << 20, max(int(est * 1.5), 32 << 20)))

    dims = [d_pad] + n_pads
    flops = 2 * B * sum(k * n for k, n in zip(dims[:-1], dims[1:]))
    bytes_accessed = x_bf.size * 2 + const_bytes + B * n_out_pad * out_isize

    out = pl.pallas_call(
        _mlp_kernel,
        out_shape=jax.ShapeDtypeStruct((B, n_out_pad), out_dtype),
        grid=(pl.cdiv(B, tb),),
        in_specs=in_specs,
        out_specs=row_spec((tb, n_out_pad)),
        compiler_params=pltpu.CompilerParams(
            dimension_semantics=("parallel",),
            vmem_limit_bytes=vmem_limit),
        cost_estimate=pl.CostEstimate(flops=flops, transcendentals=0,
                                      bytes_accessed=bytes_accessed),
    )(*inputs)

    # Only the (cheap) column slice remains; no batch-row padding to strip.
    return out[:, :out_features]


def reference_forward(x, params, out_features):
    """Pure-JAX reference replicating the kernel math (bf16 matmul inputs, f32 accumulate)."""
    B, F = x.shape
    d_pad = params[0]["w"].shape[0]
    h = x.astype(jnp.bfloat16)
    if d_pad > F:
        h = jnp.pad(h, ((0, 0), (0, d_pad - F)))
    for p in params:
        h = jnp.dot(h.astype(jnp.bfloat16), p["w"], preferred_element_type=jnp.float32)
        h = jnp.maximum(h + p["shift"], 0.0)
    return h[:, :out_features]


if __name__ == "__main__":
    key = jax.random.PRNGKey(0)
    input_size = 16
    batch = 8

    key, xk = jax.random.split(key)
    x = jax.random.normal(xk, (batch, input_size), jnp.float32)

    params, hidden_sizes = make_params(key, input_size)
    out_features = hidden_sizes[-1]

    fwd = jax.jit(base_neural_network_forward, static_argnums=(2,))
    out = jax.block_until_ready(fwd(x, params, out_features))

    ref = reference_forward(x, params, out_features)
    assert out.shape == (batch, out_features), out.shape
    assert out.dtype == jnp.float32, out.dtype
    assert jnp.allclose(out, ref, atol=1e-4, rtol=1e-3), "mismatch vs pure-JAX reference"

    print("KERNEL_OK")
</pallas_src>

<mosaic_0001>
module attributes {stable_mosaic.version = 11 : i64} {
  func.func @_mlp_kernel(%arg0: i32, %arg1: memref<16x128xbf16, #tpu.memory_space<vmem>>, %arg2: memref<128x128xbf16, #tpu.memory_space<vmem>>, %arg3: memref<1x128xf32, #tpu.memory_space<vmem>>, %arg4: memref<128x128xbf16, #tpu.memory_space<vmem>>, %arg5: memref<1x128xf32, #tpu.memory_space<vmem>>, %arg6: memref<128x128xbf16, #tpu.memory_space<vmem>>, %arg7: memref<1x128xf32, #tpu.memory_space<vmem>>, %arg8: memref<16x128xf32, #tpu.memory_space<vmem>>) attributes {dimension_semantics = [#tpu.dimension_semantics<parallel>], iteration_bounds = array<i64: 1>, scalar_prefetch = 0 : i64, scratch_operands = 0 : i64, tpu.core_type = #tpu.core_type<tc>, window_params = [{transform_indices = @transform_0, window_bounds = array<i64: 16, 128>}, {pipeline_mode = #tpu.pipeline_mode<synchronous>, transform_indices = @transform_1, window_bounds = array<i64: 128, 128>}, {pipeline_mode = #tpu.pipeline_mode<synchronous>, transform_indices = @transform_2, window_bounds = array<i64: 1, 128>}, {pipeline_mode = #tpu.pipeline_mode<synchronous>, transform_indices = @transform_3, window_bounds = array<i64: 128, 128>}, {pipeline_mode = #tpu.pipeline_mode<synchronous>, transform_indices = @transform_4, window_bounds = array<i64: 1, 128>}, {pipeline_mode = #tpu.pipeline_mode<synchronous>, transform_indices = @transform_5, window_bounds = array<i64: 128, 128>}, {pipeline_mode = #tpu.pipeline_mode<synchronous>, transform_indices = @transform_6, window_bounds = array<i64: 1, 128>}, {transform_indices = @transform_7, window_bounds = array<i64: 16, 128>}]} {
    %c0 = arith.constant 0 : index
    %c0_0 = arith.constant 0 : index
    %0 = vector.load %arg1[%c0, %c0_0] : memref<16x128xbf16, #tpu.memory_space<vmem>>, vector<16x128xbf16>
    %c0_1 = arith.constant 0 : index
    %c0_2 = arith.constant 0 : index
    %1 = vector.load %arg2[%c0_1, %c0_2] : memref<128x128xbf16, #tpu.memory_space<vmem>>, vector<128x128xbf16>
    %cst = arith.constant dense<0.000000e+00> : vector<16x128xf32>
    %2 = tpu.matmul %0, %1, %cst {dimension_numbers = #tpu.dot_dimension_numbers<[1], [0], [0], [1], [0, 0, 1, 1], [], []>} : vector<16x128xbf16>, vector<128x128xbf16>, vector<16x128xf32> -> vector<16x128xf32>
    %c0_3 = arith.constant 0 : index
    %c0_4 = arith.constant 0 : index
    %3 = vector.load %arg3[%c0_3, %c0_4] : memref<1x128xf32, #tpu.memory_space<vmem>>, vector<1x128xf32>
    %4 = vector.broadcast %3 : vector<1x128xf32> to vector<16x128xf32>
    %5 = arith.addf %2, %4 : vector<16x128xf32>
    %cst_5 = arith.constant 0.000000e+00 : f32
    %6 = vector.broadcast %cst_5 : f32 to vector<16x128xf32>
    %7 = arith.maximumf %5, %6 : vector<16x128xf32>
    %8 = arith.truncf %7 : vector<16x128xf32> to vector<16x128xbf16>
    %c0_6 = arith.constant 0 : index
    %c0_7 = arith.constant 0 : index
    %9 = vector.load %arg4[%c0_6, %c0_7] : memref<128x128xbf16, #tpu.memory_space<vmem>>, vector<128x128xbf16>
    %cst_8 = arith.constant dense<0.000000e+00> : vector<16x128xf32>
    %10 = tpu.matmul %8, %9, %cst_8 {dimension_numbers = #tpu.dot_dimension_numbers<[1], [0], [0], [1], [0, 0, 1, 1], [], []>} : vector<16x128xbf16>, vector<128x128xbf16>, vector<16x128xf32> -> vector<16x128xf32>
    %c0_9 = arith.constant 0 : index
    %c0_10 = arith.constant 0 : index
    %11 = vector.load %arg5[%c0_9, %c0_10] : memref<1x128xf32, #tpu.memory_space<vmem>>, vector<1x128xf32>
    %12 = vector.broadcast %11 : vector<1x128xf32> to vector<16x128xf32>
    %13 = arith.addf %10, %12 : vector<16x128xf32>
    %cst_11 = arith.constant 0.000000e+00 : f32
    %14 = vector.broadcast %cst_11 : f32 to vector<16x128xf32>
    %15 = arith.maximumf %13, %14 : vector<16x128xf32>
    %16 = arith.truncf %15 : vector<16x128xf32> to vector<16x128xbf16>
    %c0_12 = arith.constant 0 : index
    %c0_13 = arith.constant 0 : index
    %17 = vector.load %arg6[%c0_12, %c0_13] : memref<128x128xbf16, #tpu.memory_space<vmem>>, vector<128x128xbf16>
    %cst_14 = arith.constant dense<0.000000e+00> : vector<16x128xf32>
    %18 = tpu.matmul %16, %17, %cst_14 {dimension_numbers = #tpu.dot_dimension_numbers<[1], [0], [0], [1], [0, 0, 1, 1], [], []>} : vector<16x128xbf16>, vector<128x128xbf16>, vector<16x128xf32> -> vector<16x128xf32>
    %c0_15 = arith.constant 0 : index
    %c0_16 = arith.constant 0 : index
    %19 = vector.load %arg7[%c0_15, %c0_16] : memref<1x128xf32, #tpu.memory_space<vmem>>, vector<1x128xf32>
    %20 = vector.broadcast %19 : vector<1x128xf32> to vector<16x128xf32>
    %21 = arith.addf %18, %20 : vector<16x128xf32>
    %cst_17 = arith.constant 0.000000e+00 : f32
    %22 = vector.broadcast %cst_17 : f32 to vector<16x128xf32>
    %23 = arith.maximumf %21, %22 : vector<16x128xf32>
    %c0_18 = arith.constant 0 : index
    %c0_19 = arith.constant 0 : index
    %24 = vector.load %arg8[%c0_18, %c0_19] : memref<16x128xf32, #tpu.memory_space<vmem>>, vector<16x128xf32>
    tpu.vector_store %arg8[%c0_18, %c0_19], %23 {strides = array<i32>} : memref<16x128xf32, #tpu.memory_space<vmem>>, vector<16x128xf32>,
    return
  }
  func.func @transform_0(%arg0: i32) -> (i32, i32) {
    %c0_i32 = arith.constant 0 : i32
    %c0_i32_0 = arith.constant 0 : i32
    return %arg0, %c0_i32 : i32, i32
  }
  func.func @transform_1(%arg0: i32) -> (i32, i32) {
    %c0_i32 = arith.constant 0 : i32
    %c0_i32_0 = arith.constant 0 : i32
    %c0_i32_1 = arith.constant 0 : i32
    return %c0_i32, %c0_i32_0 : i32, i32
  }
  func.func @transform_2(%arg0: i32) -> (i32, i32) {
    %c0_i32 = arith.constant 0 : i32
    %c0_i32_0 = arith.constant 0 : i32
    %c0_i32_1 = arith.constant 0 : i32
    return %c0_i32, %c0_i32_0 : i32, i32
  }
  func.func @transform_3(%arg0: i32) -> (i32, i32) {
    %c0_i32 = arith.constant 0 : i32
    %c0_i32_0 = arith.constant 0 : i32
    %c0_i32_1 = arith.constant 0 : i32
    return %c0_i32, %c0_i32_0 : i32, i32
  }
  func.func @transform_4(%arg0: i32) -> (i32, i32) {
    %c0_i32 = arith.constant 0 : i32
    %c0_i32_0 = arith.constant 0 : i32
    %c0_i32_1 = arith.constant 0 : i32
    return %c0_i32, %c0_i32_0 : i32, i32
  }
  func.func @transform_5(%arg0: i32) -> (i32, i32) {
    %c0_i32 = arith.constant 0 : i32
    %c0_i32_0 = arith.constant 0 : i32
    %c0_i32_1 = arith.constant 0 : i32
    return %c0_i32, %c0_i32_0 : i32, i32
  }
  func.func @transform_6(%arg0: i32) -> (i32, i32) {
    %c0_i32 = arith.constant 0 : i32
    %c0_i32_0 = arith.constant 0 : i32
    %c0_i32_1 = arith.constant 0 : i32
    return %c0_i32, %c0_i32_0 : i32, i32
  }
  func.func @transform_7(%arg0: i32) -> (i32, i32) {
    %c0_i32 = arith.constant 0 : i32
    %c0_i32_0 = arith.constant 0 : i32
    return %arg0, %c0_i32 : i32, i32
  }
}

</mosaic_0001>

<bundles_post_ra>
// kernel: base_neural_network_forward.1
= control target key start
LH: loop header
LB: loop body
LE: loop exit
PB: predicated region body
PF: predicated region fallthrough
CT: control target
= control target key end

     0   :  { %12 = vsyncpa [#allocation3], 0  ;;  %s668_s0 = inlined_call_operand.vmem [shape: bf16[8,128], index: 0, kind: input, shape index: {}]   ;;  %s669_s1 = inlined_call_operand.hbm [shape: bf16[128,128], index: 1, kind: input, shape index: {}]   ;;  %s670_s2 = inlined_call_operand.vmem [shape: f32[1,128], index: 2, kind: input, shape index: {}]   ;;  %s671_s3 = inlined_call_operand.hbm [shape: bf16[128,128], index: 3, kind: input, shape index: {}]   ;;  %s672_s4 = inlined_call_operand.vmem [shape: f32[1,128], index: 4, kind: input, shape index: {}]   ;;  %s673_s5 = inlined_call_operand.hbm [shape: bf16[128,128], index: 5, kind: input, shape index: {}]   ;;  %s674_s6 = inlined_call_operand.vmem [shape: f32[1,128], index: 6, kind: input, shape index: {}]   ;;  %s675_s7 = inlined_call_operand.hbm [shape: f32[8,128], index: 7, kind: output, shape index: {}]  }
   0x1   :  { %13 = vsyncpa [#allocation6], 0 }
   0x2   :  { %14 = vsyncpa [#allocation4], 0  ;;  %s36_s26 = sshll.u32 %s671_s3, 4  ;;  %s596_s27 = smov [#allocation5]   ;;  %s37_s26 = int_to_ptr.hbm [resolvable:$true] %s36_s26 }
   0x3   :  { %s38_s28 = sshll.u32 %s596_s27, 4  ;;  %s21_s8 = sshll.u32 %s669_s1, 4  ;;  %s39_s28 = int_to_ptr.vmem [resolvable:$true] %s38_s28  ;;  %s22_s8 = int_to_ptr.hbm [resolvable:$true] %s21_s8 }
   0x4   :  { %s597_s9 = smov 64   ;;  %s598_s10 = smov 4  }
   0x5   :  { %44 = dma.hbm_to_vmem [thread:$0]  %s37_s26, 1024, %s39_s28, [#allocation6], %s597_s9, %s597_s9, %s598_s10  }
   0x6   :  { %s599_s11 = smov [#allocation2]   ;;  %s51_s15 = sshll.u32 %s673_s5, 4  ;;  %s52_s15 = int_to_ptr.hbm [resolvable:$true] %s51_s15 }
   0x7   :  { %s23_s12 = sshll.u32 %s599_s11, 4  ;;  %s600_s3 = smov [#allocation7]   ;;  %s24_s12 = int_to_ptr.vmem [resolvable:$true] %s23_s12 }
   0x8   :  { %29 = dma.hbm_to_vmem [thread:$0]  %s22_s8, 1024, %s24_s12, [#allocation3], %s597_s9, %s597_s9, %s598_s10  }
   0x9   :  { %s53_s16 = sshll.u32 %s600_s3, 4  ;;  %s54_s16 = int_to_ptr.vmem [resolvable:$true] %s53_s16 }
   0xa   :  { %59 = dma.hbm_to_vmem [thread:$0]  %s52_s15, 1024, %s54_s16, [#allocation6], %s597_s9, %s597_s9, %s598_s10  }
   0xb   :  { %590 = dma.done.wait [#allocation3], 1024  }
   0xc   :  { %591 = vsyncadd [#allocation3], 4294966272 }
   0xd   :  { %592 = dma.done.wait [#allocation6], 2048  }
   0xe   :  { %593 = vsyncadd [#allocation6], 4294965248  ;;  %v466_v0 = vld [vmem:[#allocation2 + $0x38] sm:$0xff]  ;;  %v465_v1 = vld [vmem:[#allocation2 + $0x30] sm:$0xff] }
   0xf   :  { %150 = vmatpush.bf16.msra.mxu0 %v466_v0  ;;  %v474_v2 = vld [vmem:[#allocation5 + $0x38] sm:$0xff]  ;;  %v473_v3 = vld [vmem:[#allocation5 + $0x30] sm:$0xff]  ;;  %v464_v4 = vld [vmem:[#allocation2 + $0x28] sm:$0xff] }
  0x10   :  { %235 = vmatpush.bf16.msra.mxu1 %v474_v2  ;;  %v472_v5 = vld [vmem:[#allocation5 + $0x28] sm:$0xff]  ;;  %v463_v6 = vld [vmem:[#allocation2 + $0x20] sm:$0xff]  ;;  %v462_v8 = vld [vmem:[#allocation2 + $0x18] sm:$0xff] }
  0x11   :  { %v471_v7 = vld [vmem:[#allocation5 + $0x20] sm:$0xff]  ;;  %v461_v9 = vld [vmem:[#allocation2 + $0x10] sm:$0xff]  ;;  %v460_v10 = vld [vmem:[#allocation2 + $0x8] sm:$0xff] }
  0x12   :  { %v459_v11 = vld [vmem:[#allocation2] sm:$0xff]  ;;  %v470_v13 = vld [vmem:[#allocation5 + $0x18] sm:$0xff]  ;;  %v469_v14 = vld [vmem:[#allocation5 + $0x10] sm:$0xff] }
  0x13   :  { %151 = vmatpush.bf16.msra.mxu0 %v465_v1  ;;  %v458_v12 = vld [vmem:[%s668_s0] sm:$0xff]  ;;  %v468_v15 = vld [vmem:[#allocation5 + $0x8] sm:$0xff]  ;;  %v482_v17 = vld [vmem:[#allocation7 + $0x38] sm:$0xff] }
  0x14   :  { %236 = vmatpush.bf16.msra.mxu1 %v473_v3  ;;  %v467_v16 = vld [vmem:[#allocation5] sm:$0xff]  ;;  %320 = vmatpush.bf16.msra.mxu2 %v482_v17  ;;  %v481_v18 = vld [vmem:[#allocation7 + $0x30] sm:$0xff]  ;;  %v480_v19 = vld [vmem:[#allocation7 + $0x28] sm:$0xff] }
  0x15   :  { %v479_v20 = vld [vmem:[#allocation7 + $0x20] sm:$0xff]  ;;  %v478_v29 = vld [vmem:[#allocation7 + $0x18] sm:$0xff]  ;;  %v477_v30 = vld [vmem:[#allocation7 + $0x10] sm:$0xff] }
  0x16   :  { %v491_v22 = vld [vmem:[%s670_s2] ss:$0 sm:$0xff]  ;;  %v476_v31 = vld [vmem:[#allocation7 + $0x8] sm:$0xff] }
  0x17   :  { %152 = vmatpush.bf16.msra.mxu0 %v464_v4  ;;  %v475_v32 = vld [vmem:[#allocation7] sm:$0xff] }
  0x18   :  { %237 = vmatpush.bf16.msra.mxu1 %v472_v5  ;;  %321 = vmatpush.bf16.msra.mxu2 %v481_v18  ;;  %v492_v34 = vld [vmem:[%s672_s4] ss:$0 sm:$0xff] }
  0x19   :  { %v493_v41 = vld [vmem:[%s674_s6] ss:$0 sm:$0xff] }
  0x1b   :  { %153 = vmatpush.bf16.msra.mxu0 %v463_v6 }
  0x1c   :  { %238 = vmatpush.bf16.msra.mxu1 %v471_v7  ;;  %322 = vmatpush.bf16.msra.mxu2 %v480_v19 }
  0x1f   :  { %154 = vmatpush.bf16.msra.mxu0 %v462_v8 }
  0x20   :  { %239 = vmatpush.bf16.msra.mxu1 %v470_v13  ;;  %323 = vmatpush.bf16.msra.mxu2 %v479_v20 }
  0x23   :  { %155 = vmatpush.bf16.msra.mxu0 %v461_v9 }
  0x24   :  { %240 = vmatpush.bf16.msra.mxu1 %v469_v14  ;;  %324 = vmatpush.bf16.msra.mxu2 %v478_v29 }
  0x27   :  { %156 = vmatpush.bf16.msra.mxu0 %v460_v10 }
  0x28   :  { %241 = vmatpush.bf16.msra.mxu1 %v468_v15  ;;  %325 = vmatpush.bf16.msra.mxu2 %v477_v30 }
  0x2b   :  { %157 = vmatpush.bf16.msra.mxu0 %v459_v11 }
  0x2c   :  { %242 = vmatpush.bf16.msra.mxu1 %v467_v16  ;;  %326 = vmatpush.bf16.msra.mxu2 %v476_v31 }
  0x2e   :  { %158 = vmatmul.bf16.vlgmr.msra.gmra.mxu0 %v458_v12 }
  0x30   :  { %327 = vmatpush.bf16.msra.mxu2 %v475_v32 }
  0xab   :  { %v159_v21 = vpop.f32.mrf.mxu0 }
  0xac   :  { %v160_v23 = vadd.f32 %v491_v22, %v159_v21 }
  0xae   :  { %v164_v26 = vmax.f32 %v160_v23, 0.0 }
  0xb3   :  { %v161_v24 = vpop.f32.mrf.mxu0 }
  0xb4   :  { %v162_v25 = vadd.f32 %v491_v22, %v161_v24 }
  0xb6   :  { %v165_v27 = vmax.f32 %v162_v25, 0.0 }
  0xb8   :  { %v166_v28 = vpack.c.bf16 %v165_v27, %v164_v26 }
  0xba   :  { %243 = vmatmul.bf16.vlgmr.msra.gmra.mxu1 %v166_v28 }
 0x137   :  { %v244_v33 = vpop.f32.mrf.mxu1 }
 0x138   :  { %v245_v35 = vadd.f32 %v492_v34, %v244_v33 }
 0x13a   :  { %v249_v38 = vmax.f32 %v245_v35, 0.0 }
 0x13f   :  { %v246_v36 = vpop.f32.mrf.mxu1 }
 0x140   :  { %v247_v37 = vadd.f32 %v492_v34, %v246_v36 }
 0x142   :  { %v250_v39 = vmax.f32 %v247_v37, 0.0 }
 0x144   :  { %v251_v40 = vpack.c.bf16 %v250_v39, %v249_v38 }
 0x146   :  { %328 = vmatmul.bf16.vlgmr.msra.gmra.mxu2 %v251_v40 }
 0x1c9   :  { %v329_v42 = vpop.f32.mrf.mxu2 }
 0x1ca   :  { %v330_v43 = vadd.f32 %v493_v41, %v329_v42 }
 0x1cc   :  { %v334_v44 = vmax.f32 %v330_v43, 0.0 }
 0x1ce   :  { %336 = vst [vmem:[#allocation8] sm:$0xff] %v334_v44 }
 0x1d1   :  { %v331_v45 = vpop.f32.mrf.mxu2 }
 0x1d2   :  { %v332_v46 = vadd.f32 %v493_v41, %v331_v45 }
 0x1d4   :  { %v335_v47 = vmax.f32 %v332_v46, 0.0 }
 0x1d6   :  { %337 = vst [vmem:[#allocation8 + $0x8] sm:$0xff] %v335_v47 }
 0x1d7   :  { %341 = vsyncadd [#allocation4], 128  ;;  %s344_s22 = sshll.u32 %s675_s7, 4  ;;  %s601_s23 = smov [#allocation8]   ;;  %s345_s22 = int_to_ptr.hbm [resolvable:$true] %s344_s22 }
 0x1d8   :  { %s342_s24 = sshll.u32 %s601_s23, 4  ;;  %s602_s25 = smov 128   ;;  %s343_s24 = int_to_ptr.vmem [resolvable:$true] %s342_s24 }
 0x1d9   :  { %s603_s26 = smov 8  }
 0x1da   :  { %350 = dma.vmem_to_hbm [thread:$0]  %s343_s24, 128, %s345_s22, [#allocation4], %s602_s25, %s602_s25, %s603_s26  }
 0x1db   :  { %594 = dma.done.wait [#allocation4], 256  }
 0x1dc   :  { %595 = vsyncadd [#allocation4], 4294967040 }
 0x1dd   :  { %355 = vsyncpa [#allocation3], 1 }
 0x1de   :  { %356 = vsyncpa [#allocation6], 1 }
 0x1df   :  { %357 = vsyncpa [#allocation4], 1 }

</bundles_post_ra>
